<compile_context>
chip_gen: v5e
topology: v5e:2x2
jax: 0.10.0
libtpu: 0.0.40
codegen_flags: <defaults>
</compile_context>

<pallas_src>
import math
from functools import partial

import jax
import jax.numpy as jnp
from jax.experimental import pallas as pl
from jax.experimental.pallas import tpu as pltpu


# ---------------------------------------------------------------------------
# Buffer setup (matches nn.Module.__init__; returns pe squeezed to (max_len, D))
# ---------------------------------------------------------------------------
def make_positional_encoding_table(d_model: int, max_len: int = 5000) -> jnp.ndarray:
    position = jnp.arange(max_len, dtype=jnp.float32)[:, None]               # (L, 1)
    div_term = jnp.exp(
        jnp.arange(0, d_model, 2, dtype=jnp.float32) * (-math.log(10000.0) / d_model)
    )                                                                        # (D/2,)
    pe = jnp.zeros((max_len, d_model), dtype=jnp.float32)
    pe = pe.at[:, 0::2].set(jnp.sin(position * div_term))
    pe = pe.at[:, 1::2].set(jnp.cos(position * div_term))
    return pe


# ---------------------------------------------------------------------------
# Kernel: one (tS, B, D) tile of  out = dropout(x + pe)
# ---------------------------------------------------------------------------
def _pos_enc_kernel(seed_ref, x_ref, pe_ref, o_ref, *,
                    dropout_p, apply_dropout, tile_s, batch, d_model):
    x = x_ref[...]                                  # (tS, B, D)
    pe = pe_ref[...]                                # (tS, D)
    # Do the add in the input dtype (keeps bf16 inputs in bf16 vregs; the
    # f32->x.dtype cast of pe is negligible since the pe block is tiny).
    y = x + pe[:, None, :].astype(x.dtype)          # broadcast over batch

    if apply_dropout:                               # Python-level: eval traces no mask math
        if dropout_p >= 1.0:
            y = jnp.zeros_like(y)
        else:
            i = pl.program_id(0)
            # Per-tile scalar salt: seed mix + global element offset of this
            # tile.  Computed once on the scalar unit, broadcast into the hash.
            salt = (seed_ref[0].astype(jnp.uint32) * jnp.uint32(0x9E3779B9)
                    + (i * tile_s).astype(jnp.uint32)
                    * jnp.uint32((batch * d_model) & 0xFFFFFFFF))

            shape = y.shape
            s_idx = jax.lax.broadcasted_iota(jnp.uint32, shape, 0)   # local seq idx
            b_idx = jax.lax.broadcasted_iota(jnp.uint32, shape, 1)
            d_idx = jax.lax.broadcasted_iota(jnp.uint32, shape, 2)
            flat = (s_idx * jnp.uint32(batch) + b_idx) * jnp.uint32(d_model) + d_idx

            # lowbias32 finalizer of (global flat index, seed): VPU-only,
            # hides under the DMA; distinct mask per tile and per seed.
            h = flat + salt
            h = h ^ (h >> jnp.uint32(16))
            h = h * jnp.uint32(0x7FEB352D)
            h = h ^ (h >> jnp.uint32(15))
            h = h * jnp.uint32(0x846CA68B)
            h = h ^ (h >> jnp.uint32(16))

            # keep with probability (1 - p); clamp so p -> 1 is safe.
            threshold = jnp.uint32(min(int(dropout_p * (2.0 ** 32)), 2 ** 32 - 1))
            keep = h >= threshold
            scale = jnp.asarray(1.0 / (1.0 - dropout_p), dtype=y.dtype)
            y = jnp.where(keep, y * scale, jnp.zeros_like(y))

    o_ref[...] = y.astype(o_ref.dtype)


# ---------------------------------------------------------------------------
# Wrapper: grid over S, ~2 MiB lane-dense tiles, double-buffered by Pallas
# ---------------------------------------------------------------------------
def positional_encoding_forward(x, pe_table, *, dropout_p=0.1, train=False,
                                seed=0, tile_s=None, donate_x=False):
    """x: (S, B, D).  pe_table: (max_len, D).  Returns (S, B, D)."""
    S, B, D = x.shape
    pe_slice = pe_table[:S]                                   # (S, D) static slice

    # Pick a sequence tile targeting ~2 MiB of x per block (85%+ of the measured
    # tile-size/roofline curve; with double-buffered in/out blocks this stays
    # well inside the default scoped-VMEM limit on v5e/v6e/v7x).
    if tile_s is None:
        bytes_per_row = B * D * x.dtype.itemsize
        tile_s = max(1, (2 * 1024 * 1024) // max(bytes_per_row, 1))
        # Guarantee >= 2 grid steps when S allows it so the pipeline overlaps
        # DMA with compute and both v7x TensorCores get work.
        if tile_s >= S and S >= 16:
            tile_s = -(-S // 2)
    tile_s = int(min(int(tile_s), S))
    if S < 8:
        tile_s = S                      # full extent: (8,128) rule satisfied trivially
    elif tile_s < S:
        # pe block is (tile_s, D): its second-to-last dim must be a multiple of
        # 8 (or the full extent S).
        tile_s = max(8, (tile_s // 8) * 8)
    grid = (pl.cdiv(S, tile_s),)

    seed_arr = jnp.asarray([seed], dtype=jnp.int32)
    kernel = partial(
        _pos_enc_kernel,
        dropout_p=float(dropout_p),
        apply_dropout=bool(train) and dropout_p > 0.0,
        tile_s=tile_s, batch=B, d_model=D,
    )

    return pl.pallas_call(
        kernel,
        out_shape=jax.ShapeDtypeStruct((S, B, D), x.dtype),
        grid_spec=pltpu.PrefetchScalarGridSpec(
            num_scalar_prefetch=1,                              # seed -> SMEM
            grid=grid,
            in_specs=[
                pl.BlockSpec((tile_s, B, D), lambda i, seed_ref: (i, 0, 0)),  # x
                pl.BlockSpec((tile_s, D),    lambda i, seed_ref: (i, 0)),     # pe[:S]
            ],
            out_specs=pl.BlockSpec((tile_s, B, D), lambda i, seed_ref: (i, 0, 0)),
        ),
        compiler_params=pltpu.CompilerParams(
            # Independent tiles: shard the grid across both v7x TensorCores.
            dimension_semantics=("parallel",),
        ),
        # Optionally donate x (shapes/dtypes match) to drop a full-size HBM
        # allocation; off by default so callers may still read x afterwards.
        input_output_aliases=({1: 0} if donate_x else {}),
    )(seed_arr, x, pe_slice)


# ---------------------------------------------------------------------------
# Demo / self-check (small, but sublane/lane aligned: B=8, D=128)
# ---------------------------------------------------------------------------
if __name__ == "__main__":
    d_model = 128
    seq_len = 16
    batch = 8
    p = 0.1

    key = jax.random.PRNGKey(0)
    x = jax.random.normal(key, (seq_len, batch, d_model), dtype=jnp.float32)
    pe_table = make_positional_encoding_table(d_model, max_len=5000)
    ref = x + pe_table[:seq_len][:, None, :]

    # Eval-mode forward (dropout = identity): deterministic, exact check.
    # Explicit tile_s=8 -> 2 grid steps, exercising the pipelined/tiled path.
    out = positional_encoding_forward(x, pe_table, dropout_p=p, train=False, tile_s=8)
    out = jax.block_until_ready(out)
    assert out.shape == x.shape and out.dtype == x.dtype
    assert jnp.allclose(out, ref, atol=1e-6, rtol=1e-6)

    # Eval-mode forward through the auto-tiler (splits S=16 into 2 tiles).
    out_auto = positional_encoding_forward(x, pe_table, dropout_p=p, train=False)
    out_auto = jax.block_until_ready(out_auto)
    assert jnp.allclose(out_auto, ref, atol=1e-6, rtol=1e-6)

    # Training-mode forward (inverted dropout): kept elements are ref/(1-p),
    # dropped elements are exactly 0.
    out_train = positional_encoding_forward(
        x, pe_table, dropout_p=p, train=True, seed=1234, tile_s=8
    )
    out_train = jax.block_until_ready(out_train)
    keep = out_train != 0.0
    assert jnp.allclose(
        jnp.where(keep, out_train, 0.0),
        jnp.where(keep, ref / (1.0 - p), 0.0),
        atol=1e-5, rtol=1e-5,
    )
    drop_frac = float(1.0 - jnp.mean(keep.astype(jnp.float32)))
    assert 0.01 <= drop_frac <= 0.35, f"unexpected drop fraction {drop_frac}"

    print("KERNEL_OK")
</pallas_src>

<mosaic_0001>
module attributes {stable_mosaic.version = 11 : i64} {
  func.func @_pos_enc_kernel(%arg0: i32, %arg1: memref<1xi32, #tpu.memory_space<smem>>, %arg2: memref<8x8x128xf32, #tpu.memory_space<vmem>>, %arg3: memref<8x128xf32, #tpu.memory_space<vmem>>, %arg4: memref<8x8x128xf32, #tpu.memory_space<vmem>>) attributes {dimension_semantics = [#tpu.dimension_semantics<parallel>], iteration_bounds = array<i64: 2>, scalar_prefetch = 1 : i64, scratch_operands = 0 : i64, tpu.core_type = #tpu.core_type<tc>, window_params = [{transform_indices = @transform_0, window_bounds = array<i64: 8, 8, 128>}, {transform_indices = @transform_1, window_bounds = array<i64: 8, 128>}, {transform_indices = @transform_2, window_bounds = array<i64: 8, 8, 128>}]} {
    %c0 = arith.constant 0 : index
    %c0_0 = arith.constant 0 : index
    %c0_1 = arith.constant 0 : index
    %0 = vector.load %arg2[%c0, %c0_0, %c0_1] : memref<8x8x128xf32, #tpu.memory_space<vmem>>, vector<8x8x128xf32>
    %c0_2 = arith.constant 0 : index
    %c0_3 = arith.constant 0 : index
    %1 = vector.load %arg3[%c0_2, %c0_3] : memref<8x128xf32, #tpu.memory_space<vmem>>, vector<8x128xf32>
    %2 = vector.shape_cast %1 : vector<8x128xf32> to vector<8x1x128xf32>
    %3 = vector.broadcast %2 : vector<8x1x128xf32> to vector<8x8x128xf32>
    %4 = arith.addf %0, %3 : vector<8x8x128xf32>
    %c0_4 = arith.constant 0 : index
    %c0_5 = arith.constant 0 : index
    %c0_6 = arith.constant 0 : index
    %5 = vector.load %arg4[%c0_4, %c0_5, %c0_6] : memref<8x8x128xf32, #tpu.memory_space<vmem>>, vector<8x8x128xf32>
    tpu.vector_store %arg4[%c0_4, %c0_5, %c0_6], %4 {strides = array<i32>} : memref<8x8x128xf32, #tpu.memory_space<vmem>>, vector<8x8x128xf32>,
    return
  }
  func.func @transform_0(%arg0: i32, %arg1: memref<1xi32, #tpu.memory_space<smem>>) -> (i32, i32, i32) {
    %c0_i32 = arith.constant 0 : i32
    %c0_i32_0 = arith.constant 0 : i32
    %c0_i32_1 = arith.constant 0 : i32
    return %arg0, %c0_i32, %c0_i32_0 : i32, i32, i32
  }
  func.func @transform_1(%arg0: i32, %arg1: memref<1xi32, #tpu.memory_space<smem>>) -> (i32, i32) {
    %c0_i32 = arith.constant 0 : i32
    %c0_i32_0 = arith.constant 0 : i32
    return %arg0, %c0_i32 : i32, i32
  }
  func.func @transform_2(%arg0: i32, %arg1: memref<1xi32, #tpu.memory_space<smem>>) -> (i32, i32, i32) {
    %c0_i32 = arith.constant 0 : i32
    %c0_i32_0 = arith.constant 0 : i32
    %c0_i32_1 = arith.constant 0 : i32
    return %arg0, %c0_i32, %c0_i32_0 : i32, i32, i32
  }
}

</mosaic_0001>

<bundles_post_ra>
// kernel: tpu_custom_call.1
= control target key start
LH: loop header
LB: loop body
LE: loop exit
PB: predicated region body
PF: predicated region fallthrough
CT: control target
= control target key end

     0   :  { %9 = vsyncpa [#allocation5], 0  ;;  %s775_s0 = inlined_call_operand.<no memory space> [shape: s32[1], index: 0, kind: input, shape index: {}]   ;;  %s776_s1 = inlined_call_operand.hbm [shape: f32[16,8,128], index: 1, kind: input, shape index: {}]   ;;  %s777_s2 = inlined_call_operand.hbm [shape: f32[16,128], index: 2, kind: input, shape index: {}]   ;;  %s778_s3 = inlined_call_operand.hbm [shape: f32[16,8,128], index: 3, kind: output, shape index: {}]  }
   0x1   :  { %11 = vsyncpa [#allocation5 + $0x1], 0 }
   0x2   :  { %12 = vsyncpa [#allocation8], 0 }
   0x3   :  { %14 = vsyncpa [#allocation8 + $0x1], 0 }
   0x4   :  { %15 = vsyncpa [#allocation6], 0 }
   0x5   :  { %17 = vsyncpa [#allocation6 + $0x1], 0  ;;  %s598_s12 = smov 0   ;;  %s600_s13 = smov 0  }
   0x6   :  { %s602_s0 = smov 0   ;;  %s604_s14 = smov 0  }
   0x7 LB: > { %s619_s15 = sadd.s32 4294967295, %s572_s14   ;;  %s368_s16 = sadd.s32 4294967294, %s572_s14   ;;  %s572_s14 = sphi %s604_s14, %s789_s14   ;;  %s568_s0 = sphi %s602_s0, %s788_s0   ;;  %s564_s13 = sphi %s600_s13, %s787_s13   ;;  %s560_s12 = sphi %s598_s12, %s786_s12  }
   0x8   : > { %s623_s17 = sadd.s32 1, %s572_s14   ;;  %s30_s18 = sadd.s32 1, %s568_s0 }
   0x9   : > { %s27_s19 = ssub.s32 %s572_s14, %s623_s17  ;;  %p37_p0 = scmp.ne.s32.totalorder %s568_s0, %s564_s13 }
   0xa   : > { %p28_p1 = scmp.eq.s32.totalorder %s27_s19, 0  ;;  %p38_p2 = scmp.eq.s32.totalorder %s572_s14, 0 }
   0xb   : > { %p43_p3 = scmp.ne.s32.totalorder %s564_s13, %s560_s12  ;;  %p44_p4 = scmp.eq.s32.totalorder %s619_s15, 0 }
   0xc   : > { %s635_s20 = scalar_select %p28_p1, %s568_s0, %s30_s18  }
   0xd   : > { %p637_p5 = por %p38_p2, %p37_p0  ;;  %p641_p6 = por %p44_p4, %p43_p3 }
   0xe   : > { %p93_p7 = scmp.eq.s32.totalorder %s619_s15, 1  ;;  %p99_p8 = scmp.eq.s32.totalorder %s368_s16, 1 }
   0xf   : > { %p404_p10 = scmp.lt.s32.totalorder %s572_s14, 2  ;;  %s657_s25 = sand.u32 1, %s568_s0  }
  0x10   : > { %p648_p11 = por %p93_p7, %p37_p0  ;;  %p652_p12 = por %p99_p8, %p43_p3 }
  0x11   : > { %s385_s26 = sshll.u32 %s572_s14, 6  ;;  %s371_s27 = sshll.u32 %s657_s25, 6 }
  0x12   : > { %s128_s30 = scalar_lea.hbm %s776_s1, %s385_s26  ;;  %s123_s5 = scalar_lea.vmem [#allocation4], %s371_s27 }
  0x13   : > { %s129_s4 = sshll.u32 %s128_s30, 4  ;;  %s131_s6 = sshll.u32 %s123_s5, 4  ;;  %s130_s4 = int_to_ptr.hbm [resolvable:$true] %s129_s4  ;;  %s132_s6 = int_to_ptr.vmem [resolvable:$true] %s131_s6 }
  0x14   : > { %p666_p13 = pnand %p404_p10, %p637_p5  ;;  %p376_p0 = scmp.ge.s32.totalorder %s572_s14, 1 }
  0x15   : > { %p158_p1 = scmp.lt.s32.totalorder %s572_s14, 3  ;;  %s120_s8 = scalar_lea.sflag [#allocation5], %s657_s25 }
  0x16   : > { %s442_s9 = sshra.s32 %s130_s4, 4  ;;  %p446_p3 = pneg %p666_p13  ;;  %s443_s9 = int_to_ptr.hbm [resolvable:$true] %s442_s9 }
  0x17   : > { %s444_s10 = scalar_lea.hbm %s443_s9, 64  ;;  %s449_s18 = scalar_lea.hbm %s776_s1, 128 }
  0x18   : > { %p445_p2 = scmp.ne.s32.totalorder %s443_s9, %s444_s10  ;;  %p450_p5 = scmp.lt.s32.totalorder %s443_s9, %s776_s1 }
  0x19   : > { %p451_p8 = scmp.lt.s32.totalorder %s449_s18, %s444_s10 }
  0x1a   : > { %p447_p4 = pnand %p446_p3, %p445_p2 }
  0x1b   : > { %p452_p10 = por %p451_p8, %p450_p5 }
  0x1c   : > { %p448_p7 = pneg %p447_p4 }
  0x1e   : > { %p453_p9 = pnand %p452_p10, %p448_p7 }
  0x20   : > { %456 = shalt.err (!%p453_p9)
}
  0x21   : > { %s574_s26 = smov 128   ;;  %s575_s27 = smov 8  }
  0x22   : > { %396 = dma.hbm_to_vmem [thread:$0]  (!%p666_p13), %s130_s4, 1024, %s132_s6, %s120_s8, %s574_s26, %s574_s26, %s575_s27  }
  0x23   : > { %p690_p2 = pnand %p376_p0, %p158_p1  ;;  %s374_s29 = sshll.u32 %s657_s25, 3 }
  0x24   : > { %s375_s30 = sshll.u32 %s572_s14, 3  ;;  %s145_s16 = scalar_lea.vmem [#allocation7], %s374_s29 }
  0x25   : > { %s149_s10 = scalar_lea.hbm %s777_s2, %s375_s30  ;;  %s153_s18 = sshll.u32 %s145_s16, 4  ;;  %s154_s18 = int_to_ptr.vmem [resolvable:$true] %s153_s18 }
  0x26   : > { %s151_s11 = sshll.u32 %s149_s10, 4  ;;  %s142_s19 = scalar_lea.sflag [#allocation8], %s657_s25  ;;  %s152_s11 = int_to_ptr.hbm [resolvable:$true] %s151_s11 }
  0x27   : > { %s472_s21 = sshra.s32 %s152_s11, 4  ;;  %s479_s26 = scalar_lea.hbm %s777_s2, 16  ;;  %s473_s21 = int_to_ptr.hbm [resolvable:$true] %s472_s21 }
  0x28   : > { %s474_s4 = scalar_lea.hbm %s473_s21, 8  ;;  %p480_p4 = scmp.lt.s32.totalorder %s473_s21, %s777_s2 }
  0x29   : > { %p475_p9 = scmp.ne.s32.totalorder %s473_s21, %s474_s4  ;;  %p481_p7 = scmp.lt.s32.totalorder %s479_s26, %s474_s4 }
  0x2b   : > { %p477_p0 = pnand %p475_p9, %p446_p3  ;;  %p482_p5 = por %p481_p7, %p480_p4 }
  0x2d   : > { %p478_p1 = pneg %p477_p0 }
  0x2f   : > { %p483_p8 = pnand %p482_p5, %p478_p1 }
  0x31   : > { %486 = shalt.err (!%p483_p8)
}
  0x32   : > { %399 = dma.hbm_to_vmem [thread:$0]  (!%p666_p13), %s152_s11, 128, %s154_s18, %s142_s19  }
  0x33   : > { %162 = sbr.rel (%p690_p2) target bundleno = 78 (0x4e), region = 28  ;;  %s714_s25 = sand.u32 (!%p690_p2), 1, %s564_s13  }
  0x34   : > { %s377_s29 = sshll.u32 (!%p690_p2), %s714_s25, 6  ;;  %s165_s5 = scalar_lea.sflag (!%p690_p2), [#allocation5], %s714_s25 }
  0x35   : > { %s720_s9 = scalar_lea.vmem (!%p690_p2), [#allocation4], %s377_s29 }
  0x38   : > { %547 = dma.done.wait (%p641_p6), %s165_s5, 1024  }
  0x39   : > { %549 = vsyncadd (%p641_p6), %s165_s5, 4294966272  ;;  %s378_s7 = sshll.u32 %s714_s25, 3  ;;  %s175_s28 = scalar_lea.sflag [#allocation8], %s714_s25 }
  0x3a   : > { %s178_s10 = scalar_lea.vmem [#allocation7], %s378_s7 }
  0x3b   : > { %551 = dma.done.wait (%p641_p6), %s175_s28, 128  }
  0x3c   : > { %553 = vsyncadd (%p641_p6), %s175_s28, 4294967168  ;;  %v207_v0 = vld [vmem:[%s720_s9] sm:$0xff]  ;;  %s386_s11 = sshll.u32 %s619_s15, 6  ;;  %v208_v6 = vld [vmem:[%s720_s9 + $0x8] sm:$0xff]  ;;  %s204_s15 = scalar_lea.vmem [#allocation9], %s377_s29 }
  0x3d   : > { %v215_v1 = vld [vmem:[%s178_s10] sm:$0xff]  ;;  %v209_v7 = vld [vmem:[%s720_s9 + $0x10] sm:$0xff]  ;;  %v210_v8 = vld [vmem:[%s720_s9 + $0x18] sm:$0xff]  ;;  %s268_s18 = scalar_lea.hbm %s778_s3, %s386_s11  ;;  %s269_s19 = sshll.u32 %s204_s15, 4  ;;  %s270_s19 = int_to_ptr.vmem [resolvable:$true] %s269_s19 }
  0x3e   : > { %v224_v2 = vperm.slane %v215_v1, 0  ;;  %v217_v3 = vrot.slane %v215_v1, 1  ;;  %v218_v4 = vrot.slane %v215_v1, 2  ;;  %v219_v5 = vrot.slane %v215_v1, 3  ;;  %v211_v16 = vld [vmem:[%s720_s9 + $0x20] sm:$0xff]  ;;  %v212_v18 = vld [vmem:[%s720_s9 + $0x28] sm:$0xff] }
  0x3f   : > { %v220_v9 = vrot.slane %v215_v1, 4  ;;  %v221_v10 = vrot.slane %v215_v1, 5  ;;  %v222_v11 = vrot.slane %v215_v1, 6  ;;  %v223_v21 = vrot.slane %v215_v1, 7  ;;  %v213_v25 = vld [vmem:[%s720_s9 + $0x30] sm:$0xff]  ;;  %v214_v27 = vld [vmem:[%s720_s9 + $0x38] sm:$0xff] }
  0x40   : > { %v240_v12 = vadd.f32 %v224_v2, %v207_v0  ;;  %v225_v13 = vperm.slane %v217_v3, 0  ;;  %v226_v14 = vperm.slane %v218_v4, 0  ;;  %v227_v15 = vperm.slane %v219_v5, 0  ;;  %s271_s21 = sshll.u32 %s268_s18, 4  ;;  %s257_s4 = scalar_lea.sflag [#allocation6], %s714_s25  ;;  %s272_s21 = int_to_ptr.hbm [resolvable:$true] %s271_s21 }
  0x41   : > { %v228_v17 = vperm.slane %v220_v9, 0  ;;  %v229_v19 = vperm.slane %v221_v10, 0  ;;  %v230_v20 = vperm.slane %v222_v11, 0  ;;  %v231_v28 = vperm.slane %v223_v21, 0  ;;  %s516_s6 = sshra.s32 %s272_s21, 4  ;;  %s522_s30 = scalar_lea.hbm %s778_s3, 128  ;;  %s517_s6 = int_to_ptr.hbm [resolvable:$true] %s516_s6 }
  0x42   : > { %248 = vst [vmem:[%s204_s15] sm:$0xff] %v240_v12  ;;  %v241_v22 = vadd.f32 %v225_v13, %v208_v6  ;;  %v242_v23 = vadd.f32 %v226_v14, %v209_v7  ;;  %v243_v24 = vadd.f32 %v227_v15, %v210_v8  ;;  %s518_s8 = scalar_lea.hbm %s517_s6, 64  ;;  %p523_p10 = scmp.lt.s32.totalorder %s517_s6, %s778_s3 }
  0x43   : > { %v244_v26 = vadd.f32 %v228_v17, %v211_v16  ;;  %v245_v29 = vadd.f32 %v229_v19, %v212_v18  ;;  %v246_v30 = vadd.f32 %v230_v20, %v213_v25  ;;  %v247_v31 = vadd.f32 %v231_v28, %v214_v27  ;;  %p519_p6 = scmp.ne.s32.totalorder %s517_s6, %s518_s8  ;;  %p524_p2 = scmp.lt.s32.totalorder %s522_s30, %s518_s8 }
  0x44   : > { %249 = vst [vmem:[%s204_s15 + $0x8] sm:$0xff] %v241_v22 }
  0x45   : > { %250 = vst [vmem:[%s204_s15 + $0x10] sm:$0xff] %v242_v23  ;;  %p520_p13 = pnand %p519_p6, %p648_p11  ;;  %p525_p9 = por %p524_p2, %p523_p10 }
  0x46   : > { %251 = vst [vmem:[%s204_s15 + $0x18] sm:$0xff] %v243_v24 }
  0x47   : > { %252 = vst [vmem:[%s204_s15 + $0x20] sm:$0xff] %v244_v26  ;;  %p521_p3 = pneg %p520_p13 }
  0x48   : > { %253 = vst [vmem:[%s204_s15 + $0x28] sm:$0xff] %v245_v29 }
  0x49   : > { %254 = vst [vmem:[%s204_s15 + $0x30] sm:$0xff] %v246_v30  ;;  %p526_p0 = pnand %p525_p9, %p521_p3 }
  0x4a   : > { %255 = vst [vmem:[%s204_s15 + $0x38] sm:$0xff] %v247_v31 }
  0x4b   : > { %529 = shalt.err (!%p526_p0)
}
  0x4c   : > { %s576_s25 = smov 128   ;;  %s577_s9 = smov 8  }
  0x4d   : > { %391 = dma.vmem_to_hbm [thread:$0]  (%p648_p11), %s270_s19, 1024, %s272_s21, %s257_s4, %s576_s25, %s576_s25, %s577_s9  }
  0x4e PF: > { %s286_s7 = sand.u32 1, %s560_s12   ;;  %p785_p1 = scmp.ge.s32.totalorder %s572_s14, 2 }
  0x4f   : > { %s287_s28 = scalar_lea.sflag [#allocation6], %s286_s7 }
  0x50   : > { %p401_p4 = pnand %p785_p1, %p652_p12 }
  0x52   : > { %p402_p7 = pneg %p401_p4 }
  0x54   : > { %555 = dma.done.wait (%p402_p7), %s287_s28, 1024  }
  0x55   : > { %557 = vsyncadd (%p402_p7), %s287_s28, 4294966272  ;;  %p20_p5 = scmp.ge.s32.totalorder %s623_s17, 4   ;;  %s786_s12 = smov %s564_s13 }
  0x56   : > { %s787_s13 = smov %s568_s0  ;;  %s788_s0 = smov %s635_s20 }
  0x57   : > { %s789_s14 = smov %s623_s17  ;;  %22 = sbr.rel (!%p20_p5) target bundleno = 7 (0x7), region = 86 }
  0x5c   :  { %293 = vsyncpa [#allocation5], 1 }
  0x5d   :  { %295 = vsyncpa [#allocation5 + $0x1], 1 }
  0x5e   :  { %296 = vsyncpa [#allocation8], 1 }
  0x5f   :  { %298 = vsyncpa [#allocation8 + $0x1], 1 }
  0x60   :  { %299 = vsyncpa [#allocation6], 1 }
  0x61   :  { %301 = vsyncpa [#allocation6 + $0x1], 1 }

</bundles_post_ra>
